<compile_context>
chip_gen: v7x
topology: tpu7x:2x2x1
jax: 0.10.0
libtpu: 0.0.40
codegen_flags: <defaults>
</compile_context>

<pallas_src>
import functools

import jax
import jax.numpy as jnp
from jax import lax
from jax.experimental import pallas as pl
from jax.experimental.pallas import tpu as pltpu

LANE_W = 1024       # lane-dense slab width (multiple of 128)
TILE_M_MAX = 256    # rows per block -> up to 1 MiB f32 per operand block


def _round_up(x, m):
    return ((x + m - 1) // m) * m


def _pow_gamma(x, gamma):
    """x**gamma, using repeated VPU multiplies for small integer gamma."""
    g = float(gamma)
    if g == 0.0:
        return jnp.ones_like(x)
    if g.is_integer() and 1.0 <= g <= 8.0:
        r = x
        for _ in range(int(g) - 1):
            r = r * x
        return r
    return x ** jnp.float32(g)


def _focal_terms(p, t, alpha, gamma, eps):
    """Elementwise focal-loss math (matches BinaryFocalLoss.forward)."""
    p = p.astype(jnp.float32)
    t = t.astype(jnp.float32)
    p = jnp.clip(p, eps, 1.0 - eps)
    # F.binary_cross_entropy clamps each log term at -100; this also avoids
    # 0 * (-inf) = NaN when (1 - eps) rounds to exactly 1.0 in f32.
    log_p = jnp.maximum(jnp.log(p), -100.0)
    log_1mp = jnp.maximum(jnp.log(1.0 - p), -100.0)
    ce = -(t * log_p + (1.0 - t) * log_1mp)
    pt = jnp.where(t == 1.0, p, 1.0 - p)
    alpha_t = jnp.where(t == 1.0, alpha, 1.0 - alpha)
    return alpha_t * _pow_gamma(1.0 - pt, gamma) * ce


def _focal_map_kernel(p_ref, t_ref, o_ref, *, alpha, gamma, eps):
    """Elementwise focal map (reduction='none'); padding sliced off outside."""
    o_ref[...] = _focal_terms(p_ref[...], t_ref[...],
                              alpha, gamma, eps).astype(o_ref.dtype)


def _focal_sum_kernel(p_ref, t_ref, o_ref, acc_ref, *,
                      alpha, gamma, eps, n_valid, tile_m, inner):
    """Grid: (splits[parallel], row-tiles[arbitrary]); per-split partial sums."""
    c = pl.program_id(0)          # megacore split
    i = pl.program_id(1)          # reduction walk

    @pl.when(i == 0)
    def _():
        acc_ref[...] = jnp.zeros_like(acc_ref)

    focal = _focal_terms(p_ref[...], t_ref[...], alpha, gamma, eps)

    # In-kernel validity mask (no HBM mask array): global flat index < n_valid.
    block = c * inner + i
    row_ids = lax.broadcasted_iota(jnp.int32, focal.shape, 0)
    col_ids = lax.broadcasted_iota(jnp.int32, focal.shape, 1)
    flat_idx = (block * tile_m + row_ids) * LANE_W + col_ids
    focal = jnp.where(flat_idx < n_valid, focal, 0.0)

    acc_ref[...] += focal         # plain VPU add; hidden under DMA

    @pl.when(i == pl.num_programs(1) - 1)
    def _():
        s = jnp.sum(acc_ref[...])                   # single XLU reduce per split
        o_ref[...] = jnp.full((8, 128), s, jnp.float32)


def binary_focal_loss(p, targets, *, alpha=0.25, gamma=2.0,
                      reduction="mean", eps=1e-8):
    orig_shape = p.shape
    n = int(p.size)

    p_flat = p.reshape(-1)
    t_flat = targets.reshape(-1)

    rows = pl.cdiv(n, LANE_W)
    tile_m = min(TILE_M_MAX, _round_up(max(rows, 1), 8))

    if reduction == "none":
        rows_pad = _round_up(max(rows, 1), tile_m)
        pad = rows_pad * LANE_W - n
        p_pad = jnp.pad(p_flat, (0, pad)).reshape(rows_pad, LANE_W)
        t_pad = jnp.pad(t_flat, (0, pad)).reshape(rows_pad, LANE_W)
        grid = rows_pad // tile_m

        kernel = functools.partial(_focal_map_kernel,
                                   alpha=alpha, gamma=gamma, eps=eps)
        out = pl.pallas_call(
            kernel,
            out_shape=jax.ShapeDtypeStruct((rows_pad, LANE_W), p.dtype),
            grid_spec=pltpu.PrefetchScalarGridSpec(
                num_scalar_prefetch=0,
                grid=(grid,),
                in_specs=[pl.BlockSpec((tile_m, LANE_W), lambda i: (i, 0)),
                          pl.BlockSpec((tile_m, LANE_W), lambda i: (i, 0))],
                out_specs=pl.BlockSpec((tile_m, LANE_W), lambda i: (i, 0)),
            ),
            compiler_params=pltpu.CompilerParams(
                dimension_semantics=("parallel",)),
        )(p_pad, t_pad)
        return out.reshape(-1)[:n].reshape(orig_shape)

    if reduction not in ("mean", "sum"):
        raise ValueError(f"unknown reduction: {reduction}")

    # 'mean' / 'sum': per-split partial sums accumulated in a VMEM vector acc.
    total_blocks = pl.cdiv(max(rows, 1), tile_m)
    n_splits = 2 if total_blocks >= 2 else 1      # 2-TC split on v7x, no-op elsewhere
    inner = pl.cdiv(total_blocks, n_splits)
    rows_pad = n_splits * inner * tile_m
    pad = rows_pad * LANE_W - n
    p_pad = jnp.pad(p_flat, (0, pad)).reshape(rows_pad, LANE_W)
    t_pad = jnp.pad(t_flat, (0, pad)).reshape(rows_pad, LANE_W)

    kernel = functools.partial(_focal_sum_kernel,
                               alpha=alpha, gamma=gamma, eps=eps,
                               n_valid=n, tile_m=tile_m, inner=inner)
    partials = pl.pallas_call(
        kernel,
        out_shape=jax.ShapeDtypeStruct((n_splits * 8, 128), jnp.float32),
        grid_spec=pltpu.PrefetchScalarGridSpec(
            num_scalar_prefetch=0,
            grid=(n_splits, inner),
            in_specs=[pl.BlockSpec((tile_m, LANE_W),
                                   lambda c, i: (c * inner + i, 0)),
                      pl.BlockSpec((tile_m, LANE_W),
                                   lambda c, i: (c * inner + i, 0))],
            out_specs=pl.BlockSpec((8, 128), lambda c, i: (c, 0)),
            scratch_shapes=[pltpu.VMEM((tile_m, LANE_W), jnp.float32)],
        ),
        compiler_params=pltpu.CompilerParams(
            dimension_semantics=("parallel", "arbitrary")),
    )(p_pad, t_pad)

    total = jnp.sum(partials[::8, 0])     # one scalar per split
    if reduction == "mean":
        return total / jnp.float32(n)
    return total


def _reference(p, t, alpha=0.25, gamma=2.0, reduction="mean", eps=1e-8):
    p = jnp.clip(p.astype(jnp.float32), eps, 1.0 - eps)
    t = t.astype(jnp.float32)
    ce = -(t * jnp.maximum(jnp.log(p), -100.0)
           + (1.0 - t) * jnp.maximum(jnp.log(1.0 - p), -100.0))
    pt = jnp.where(t == 1.0, p, 1.0 - p)
    alpha_t = jnp.where(t == 1.0, alpha, 1.0 - alpha)
    focal = alpha_t * (1.0 - pt) ** gamma * ce
    if reduction == "mean":
        return focal.mean()
    if reduction == "sum":
        return focal.sum()
    return focal


if __name__ == "__main__":
    key = jax.random.PRNGKey(0)
    kp, kt = jax.random.split(key)
    # Small NCHW-shaped probabilities / binary targets.
    p = jax.random.uniform(kp, (2, 4, 16, 16), dtype=jnp.float32)
    targets = (jax.random.uniform(kt, (2, 4, 16, 16)) > 0.5).astype(jnp.float32)

    out_mean = jax.block_until_ready(binary_focal_loss(p, targets, reduction="mean"))
    out_sum = jax.block_until_ready(binary_focal_loss(p, targets, reduction="sum"))
    out_none = jax.block_until_ready(binary_focal_loss(p, targets, reduction="none"))

    ref_mean = _reference(p, targets, reduction="mean")
    ref_sum = _reference(p, targets, reduction="sum")
    ref_none = _reference(p, targets, reduction="none")

    assert jnp.allclose(out_mean, ref_mean, rtol=1e-5, atol=1e-6), (out_mean, ref_mean)
    assert jnp.allclose(out_sum, ref_sum, rtol=1e-5, atol=1e-4), (out_sum, ref_sum)
    assert jnp.allclose(out_none, ref_none, rtol=1e-5, atol=1e-6)

    print("KERNEL_OK")
</pallas_src>

<mosaic_0001>
module attributes {stable_mosaic.version = 11 : i64} {
  func.func @_focal_sum_kernel(%arg0: i32, %arg1: i32, %arg2: memref<8x1024xf32, #tpu.memory_space<vmem>>, %arg3: memref<8x1024xf32, #tpu.memory_space<vmem>>, %arg4: memref<8x128xf32, #tpu.memory_space<vmem>>, %arg5: memref<8x1024xf32, #tpu.memory_space<vmem>>) attributes {dimension_semantics = [#tpu.dimension_semantics<parallel>, #tpu.dimension_semantics<arbitrary>], iteration_bounds = array<i64: 1, 1>, scalar_prefetch = 0 : i64, scratch_operands = 1 : i64, tpu.core_type = #tpu.core_type<tc>, window_params = [{transform_indices = @transform_0, window_bounds = array<i64: 8, 1024>}, {transform_indices = @transform_1, window_bounds = array<i64: 8, 1024>}, {transform_indices = @transform_2, window_bounds = array<i64: 8, 128>}]} {
    %c0_i32 = arith.constant 0 : i32
    %0 = arith.cmpi eq, %arg1, %c0_i32 : i32
    %1 = arith.extui %0 : i1 to i32
    %c0_i32_0 = arith.constant 0 : i32
    %2 = arith.cmpi ne, %1, %c0_i32_0 : i32
    scf.if %2 {
      %cst_23 = arith.constant 0.000000e+00 : f32
      %59 = vector.broadcast %cst_23 : f32 to vector<8x1024xf32>
      %c0_24 = arith.constant 0 : index
      %c0_25 = arith.constant 0 : index
      %60 = vector.load %arg5[%c0_24, %c0_25] : memref<8x1024xf32, #tpu.memory_space<vmem>>, vector<8x1024xf32>
      tpu.vector_store %arg5[%c0_24, %c0_25], %59 {strides = array<i32>} : memref<8x1024xf32, #tpu.memory_space<vmem>>, vector<8x1024xf32>,
    } else {
    }
    %c0 = arith.constant 0 : index
    %c0_1 = arith.constant 0 : index
    %3 = vector.load %arg2[%c0, %c0_1] : memref<8x1024xf32, #tpu.memory_space<vmem>>, vector<8x1024xf32>
    %c0_2 = arith.constant 0 : index
    %c0_3 = arith.constant 0 : index
    %4 = vector.load %arg3[%c0_2, %c0_3] : memref<8x1024xf32, #tpu.memory_space<vmem>>, vector<8x1024xf32>
    %cst = arith.constant 9.99999993E-9 : f32
    %cst_4 = arith.constant 1.000000e+00 : f32
    %5 = vector.broadcast %cst : f32 to vector<8x1024xf32>
    %6 = arith.maximumf %5, %3 : vector<8x1024xf32>
    %7 = vector.broadcast %cst_4 : f32 to vector<8x1024xf32>
    %8 = arith.minimumf %7, %6 : vector<8x1024xf32>
    %9 = math.log %8 : vector<8x1024xf32>
    %cst_5 = arith.constant -1.000000e+02 : f32
    %10 = vector.broadcast %cst_5 : f32 to vector<8x1024xf32>
    %11 = arith.maximumf %9, %10 : vector<8x1024xf32>
    %cst_6 = arith.constant 1.000000e+00 : f32
    %12 = vector.broadcast %cst_6 : f32 to vector<8x1024xf32>
    %13 = arith.subf %12, %8 : vector<8x1024xf32>
    %14 = math.log %13 : vector<8x1024xf32>
    %cst_7 = arith.constant -1.000000e+02 : f32
    %15 = vector.broadcast %cst_7 : f32 to vector<8x1024xf32>
    %16 = arith.maximumf %14, %15 : vector<8x1024xf32>
    %17 = arith.mulf %4, %11 : vector<8x1024xf32>
    %cst_8 = arith.constant 1.000000e+00 : f32
    %18 = vector.broadcast %cst_8 : f32 to vector<8x1024xf32>
    %19 = arith.subf %18, %4 : vector<8x1024xf32>
    %20 = arith.mulf %19, %16 : vector<8x1024xf32>
    %21 = arith.addf %17, %20 : vector<8x1024xf32>
    %cst_9 = arith.constant 0.000000e+00 : f32
    %22 = vector.broadcast %cst_9 : f32 to vector<8x1024xf32>
    %23 = arith.subf %22, %21 : vector<8x1024xf32>
    %cst_10 = arith.constant 1.000000e+00 : f32
    %24 = vector.broadcast %cst_10 : f32 to vector<8x1024xf32>
    %25 = arith.cmpf oeq, %4, %24 : vector<8x1024xf32>
    %cst_11 = arith.constant 1.000000e+00 : f32
    %26 = vector.broadcast %cst_11 : f32 to vector<8x1024xf32>
    %27 = arith.subf %26, %8 : vector<8x1024xf32>
    %28 = arith.select %25, %8, %27 : vector<8x1024xi1>, vector<8x1024xf32>
    %cst_12 = arith.constant 1.000000e+00 : f32
    %29 = vector.broadcast %cst_12 : f32 to vector<8x1024xf32>
    %30 = arith.cmpf oeq, %4, %29 : vector<8x1024xf32>
    %cst_13 = arith.constant 2.500000e-01 : f32
    %cst_14 = arith.constant 7.500000e-01 : f32
    %31 = vector.broadcast %cst_13 : f32 to vector<8x1024xf32>
    %32 = vector.broadcast %cst_14 : f32 to vector<8x1024xf32>
    %33 = arith.select %30, %31, %32 : vector<8x1024xi1>, vector<8x1024xf32>
    %cst_15 = arith.constant 1.000000e+00 : f32
    %34 = vector.broadcast %cst_15 : f32 to vector<8x1024xf32>
    %35 = arith.subf %34, %28 : vector<8x1024xf32>
    %36 = arith.mulf %35, %35 : vector<8x1024xf32>
    %37 = arith.mulf %33, %36 : vector<8x1024xf32>
    %38 = arith.mulf %37, %23 : vector<8x1024xf32>
    %c1_i32 = arith.constant 1 : i32
    %39 = arith.muli %arg0, %c1_i32 : i32
    %40 = arith.addi %39, %arg1 : i32
    %41 = tpu.iota {dimensions = array<i32: 0>} : vector<8x1024xi32>
    %42 = tpu.iota {dimensions = array<i32: 1>} : vector<8x1024xi32>
    %c8_i32 = arith.constant 8 : i32
    %43 = arith.muli %40, %c8_i32 : i32
    %44 = vector.broadcast %43 : i32 to vector<8x1024xi32>
    %45 = arith.addi %44, %41 : vector<8x1024xi32>
    %c1024_i32 = arith.constant 1024 : i32
    %46 = vector.broadcast %c1024_i32 : i32 to vector<8x1024xi32>
    %47 = arith.muli %45, %46 : vector<8x1024xi32>
    %48 = arith.addi %47, %42 : vector<8x1024xi32>
    %c2048_i32 = arith.constant 2048 : i32
    %49 = vector.broadcast %c2048_i32 : i32 to vector<8x1024xi32>
    %50 = arith.cmpi slt, %48, %49 : vector<8x1024xi32>
    %cst_16 = arith.constant 0.000000e+00 : f32
    %51 = vector.broadcast %cst_16 : f32 to vector<8x1024xf32>
    %52 = arith.select %50, %38, %51 : vector<8x1024xi1>, vector<8x1024xf32>
    %c0_17 = arith.constant 0 : index
    %c0_18 = arith.constant 0 : index
    %53 = vector.load %arg5[%c0_17, %c0_18] : memref<8x1024xf32, #tpu.memory_space<vmem>>, vector<8x1024xf32>
    %54 = arith.addf %53, %52 : vector<8x1024xf32>
    %c0_19 = arith.constant 0 : index
    %c0_20 = arith.constant 0 : index
    %55 = vector.load %arg5[%c0_19, %c0_20] : memref<8x1024xf32, #tpu.memory_space<vmem>>, vector<8x1024xf32>
    tpu.vector_store %arg5[%c0_19, %c0_20], %54 {strides = array<i32>} : memref<8x1024xf32, #tpu.memory_space<vmem>>, vector<8x1024xf32>,
    %c0_i32_21 = arith.constant 0 : i32
    %56 = arith.cmpi eq, %arg1, %c0_i32_21 : i32
    %57 = arith.extui %56 : i1 to i32
    %c0_i32_22 = arith.constant 0 : i32
    %58 = arith.cmpi ne, %57, %c0_i32_22 : i32
    scf.if %58 {
      %c0_23 = arith.constant 0 : index
      %c0_24 = arith.constant 0 : index
      %59 = vector.load %arg5[%c0_23, %c0_24] : memref<8x1024xf32, #tpu.memory_space<vmem>>, vector<8x1024xf32>
      %60 = vector.shape_cast %59 : vector<8x1024xf32> to vector<1x8x1024xf32>
      %cst_25 = arith.constant dense<0.000000e+00> : vector<1xf32>
      %61 = vector.multi_reduction <add>, %60, %cst_25 [1, 2] : vector<1x8x1024xf32> to vector<1xf32>
      %62 = vector.shape_cast %61 : vector<1xf32> to vector<1x1x1xf32>
      %63 = vector.extract %62[0, 0, 0] : f32 from vector<1x1x1xf32>
      %64 = vector.broadcast %63 : f32 to vector<8x128xf32>
      %c0_26 = arith.constant 0 : index
      %c0_27 = arith.constant 0 : index
      %65 = vector.load %arg4[%c0_26, %c0_27] : memref<8x128xf32, #tpu.memory_space<vmem>>, vector<8x128xf32>
      tpu.vector_store %arg4[%c0_26, %c0_27], %64 {strides = array<i32>} : memref<8x128xf32, #tpu.memory_space<vmem>>, vector<8x128xf32>,
    } else {
    }
    return
  }
  func.func @transform_0(%arg0: i32, %arg1: i32) -> (i32, i32) {
    %c1_i32 = arith.constant 1 : i32
    %0 = arith.muli %arg0, %c1_i32 : i32
    %1 = arith.addi %0, %arg1 : i32
    %c0_i32 = arith.constant 0 : i32
    %c0_i32_0 = arith.constant 0 : i32
    return %1, %c0_i32 : i32, i32
  }
  func.func @transform_1(%arg0: i32, %arg1: i32) -> (i32, i32) {
    %c1_i32 = arith.constant 1 : i32
    %0 = arith.muli %arg0, %c1_i32 : i32
    %1 = arith.addi %0, %arg1 : i32
    %c0_i32 = arith.constant 0 : i32
    %c0_i32_0 = arith.constant 0 : i32
    return %1, %c0_i32 : i32, i32
  }
  func.func @transform_2(%arg0: i32, %arg1: i32) -> (i32, i32) {
    %c0_i32 = arith.constant 0 : i32
    %c0_i32_0 = arith.constant 0 : i32
    return %arg0, %c0_i32 : i32, i32
  }
}

</mosaic_0001>

<bundles_post_ra>
// kernel: tpu_custom_call.1
= control target key start
LH: loop header
LB: loop body
LE: loop exit
PB: predicated region body
PF: predicated region fallthrough
CT: control target
= control target key end

     0   :  { %7 = vsyncpa [#allocation4], 0  ;;  %s721_s0 = inlined_call_operand.hbm [shape: f32[8,1024], index: 0, kind: input, shape index: {}]   ;;  %s722_s1 = inlined_call_operand.hbm [shape: f32[8,1024], index: 1, kind: input, shape index: {}]   ;;  %s723_s2 = inlined_call_operand.hbm [shape: f32[8,128], index: 2, kind: output, shape index: {}]  }
   0x1   :  { %8 = vsyncpa [#allocation7], 0 }
   0x2   :  { %9 = vsyncpa [#allocation5], 0  ;;  %s461_s9 = smov [#allocation3]   ;;  %s462_s11 = smov [#allocation6]  }
   0x3   :  { %s20_s10 = sshll.u32 %s461_s9, 4  ;;  %s34_s12 = sshll.u32 %s462_s11, 4  ;;  %s21_s10 = int_to_ptr.vmem [resolvable:$true] %s20_s10  ;;  %s35_s12 = int_to_ptr.vmem [resolvable:$true] %s34_s12 }
   0x4   :  { %s389_s15 = scalar_lea.hbm %s721_s0, 1024 }
   0x5   :  { %p390_p0 = scmp.ne.s32.totalorder %s721_s0, %s389_s15  ;;  %p393_p1 = scmp.lt.u32.totalorder %s389_s15, %s721_s0 }
   0x7   :  { %p395_p2 = pnand %p393_p1, %p390_p0 }
   0x9   :  { %398 = shalt.err (!%p395_p2)
}
   0xa   :  { %s399_s20 = scalar_lea.vmem %s21_s10, 1024  ;;  %p404_p4 = scmp.lt.s32.totalorder %s21_s10, %s21_s10 }
   0xb   :  { %p400_p3 = scmp.ne.s32.totalorder %s21_s10, %s399_s20  ;;  %p405_p5 = scmp.lt.s32.totalorder %s399_s20, %s399_s20 }
   0xd   :  { %p406_p6 = por %p405_p5, %p404_p4 }
   0xf   :  { %p407_p7 = pnand %p406_p6, %p400_p3 }
  0x11   :  { %410 = shalt.err (!%p407_p7)
}
  0x12   :  { %23 = dma.hbm_to_vmem [thread:$0]  %s721_s0, 1024, %s21_s10, [#allocation4]  }
  0x13   :  { %s411_s25 = scalar_lea.hbm %s722_s1, 1024 }
  0x14   :  { %p412_p8 = scmp.ne.s32.totalorder %s722_s1, %s411_s25  ;;  %p415_p9 = scmp.lt.u32.totalorder %s411_s25, %s722_s1 }
  0x16   :  { %p417_p10 = pnand %p415_p9, %p412_p8 }
  0x18   :  { %420 = shalt.err (!%p417_p10)
}
  0x19   :  { %s421_s30 = scalar_lea.vmem %s35_s12, 1024  ;;  %p426_p12 = scmp.lt.s32.totalorder %s35_s12, %s35_s12 }
  0x1a   :  { %p422_p11 = scmp.ne.s32.totalorder %s35_s12, %s421_s30  ;;  %p427_p13 = scmp.lt.s32.totalorder %s421_s30, %s421_s30 }
  0x1c   :  { %p428_p0 = por %p427_p13, %p426_p12 }
  0x1e   :  { %p429_p1 = pnand %p428_p0, %p422_p11 }
  0x20   :  { %432 = shalt.err (!%p429_p1)
}
  0x21   :  { %37 = dma.hbm_to_vmem [thread:$0]  %s722_s1, 1024, %s35_s12, [#allocation7]  }
  0x22   :  { %455 = dma.done.wait [#allocation4], 1024  }
  0x23   :  { %456 = vsyncadd [#allocation4], 4294966272 }
  0x24   :  { %457 = dma.done.wait [#allocation7], 1024  }
  0x25   :  { %458 = vsyncadd [#allocation7], 4294966272  ;;  %v243_v0 = vlaneseq  ;;  %v58_v1 = vld [vmem:[#allocation3] sm:$0xff]  ;;  %v59_v2 = vld [vmem:[#allocation3 + $0x8] sm:$0xff]  ;;  %s464_s1 = smov [#allocation8]  }
  0x26   :  { %v60_v3 = vld [vmem:[#allocation3 + $0x10] sm:$0xff]  ;;  %v61_v5 = vld [vmem:[#allocation3 + $0x18] sm:$0xff]  ;;  %v74_v6 = vmax.f32 %v58_v1, 1e-08  ;;  %v62_v7 = vld [vmem:[#allocation3 + $0x20] sm:$0xff]  ;;  %s341_s4 = sshll.u32 %s464_s1, 4  ;;  %s342_s4 = int_to_ptr.vmem [resolvable:$true] %s341_s4 }
  0x27   :  { %v246_v4 = vand.u32 127, %v243_v0  ;;  %v63_v8 = vld [vmem:[#allocation3 + $0x28] sm:$0xff]  ;;  %v75_v9 = vmax.f32 %v59_v2, 1e-08  ;;  %v64_v10 = vld [vmem:[#allocation3 + $0x30] sm:$0xff]  ;;  %v65_v11 = vld [vmem:[#allocation3 + $0x38] sm:$0xff]  ;;  %p438_p3 = scmp.lt.s32.totalorder %s342_s4, %s342_s4 }
  0x28   :  { %v76_v12 = vmax.f32 %v60_v3, 1e-08  ;;  %v504_v13 = vmin.f32 %v74_v6, 1.0  ;;  %v244_v14 = vshrl.u32 %v243_v0, 7  ;;  %v77_v15 = vmax.f32 %v61_v5, 1e-08 }
  0x29   :  { %v506_v16 = vmin.f32 %v75_v9, 1.0  ;;  %v247_v17 = vadd.s32 128, %v246_v4  ;;  %v78_v18 = vmax.f32 %v62_v7, 1e-08  ;;  %v79_v19 = vmax.f32 %v63_v8, 1e-08 }
  0x2a   :  { %v508_v20 = vmin.f32 %v76_v12, 1.0  ;;  %357 = vlog2.f32 %v504_v13  ;;  %v80_v21 = vmax.f32 %v64_v10, 1e-08  ;;  %v81_v22 = vmax.f32 %v65_v11, 1e-08  ;;  %v539_v39 = vld [vmem:[#allocation6] sm:$0xff] }
  0x2b   :  { %v511_v23 = vmin.f32 %v77_v15, 1.0  ;;  %359 = vlog2.f32 %v506_v16  ;;  %v514_v24 = vmin.f32 %v78_v18, 1.0  ;;  %v248_v25 = vadd.s32 256, %v246_v4  ;;  %v541_v40 = vld [vmem:[#allocation6 + $0x8] sm:$0xff]  ;;  %v551_v44 = vld [vmem:[#allocation6 + $0x10] sm:$0xff]  ;;  %v553_v45 = vld [vmem:[#allocation6 + $0x18] sm:$0xff] }
  0x2c   :  { %361 = vlog2.f32 %v508_v20  ;;  %v517_v26 = vmul.u32 1024, %v244_v14  ;;  %v519_v27 = vmin.f32 %v79_v19, 1.0  ;;  %v249_v28 = vadd.s32 384, %v246_v4  ;;  %v564_v49 = vld [vmem:[#allocation6 + $0x20] sm:$0xff]  ;;  %v566_v50 = vld [vmem:[#allocation6 + $0x28] sm:$0xff]  ;;  %v575_v55 = vld [vmem:[#allocation6 + $0x30] sm:$0xff] }
  0x2d   :  { %363 = vlog2.f32 %v511_v23  ;;  %v250_v29 = vadd.s32 512, %v246_v4  ;;  %v522_v30 = vmin.f32 %v80_v21, 1.0  ;;  %v114_v31 = vsub.f32 1.0, %v504_v13  ;;  %s433_s6 = scalar_lea.vmem %s342_s4, 128 }
  0x2e   :  { %365 = vlog2.f32 %v514_v24  ;;  %v251_v32 = vadd.s32 640, %v246_v4  ;;  %v526_v33 = vmin.f32 %v81_v22, 1.0  ;;  %v115_v34 = vsub.f32 1.0, %v506_v16  ;;  %p434_p2 = scmp.ne.s32.totalorder %s342_s4, %s433_s6  ;;  %p439_p4 = scmp.lt.s32.totalorder %s433_s6, %s433_s6 }
  0x2f   :  { %367 = vlog2.f32 %v519_v27  ;;  %v530_v35 = vadd.s32 768, %v246_v4  ;;  %v116_v36 = vsub.f32 1.0, %v508_v20  ;;  %v534_v37 = vadd.s32 896, %v246_v4 }
  0x30   :  { %369 = vlog2.f32 %v522_v30  ;;  %v537_v38 = vadd.s32 %v517_v26, %v246_v4  ;;  %v117_v41 = vsub.f32 1.0, %v511_v23  ;;  %v546_v42 = vadd.s32 %v517_v26, %v247_v17  ;;  %v586_v4 = vld [vmem:[#allocation6 + $0x38] sm:$0xff]  ;;  %p440_p5 = por %p439_p4, %p438_p3 }
  0x31   :  { %371 = vlog2.f32 %v526_v33  ;;  %v549_v43 = vadd.s32 %v517_v26, %v248_v25  ;;  %v118_v46 = vsub.f32 1.0, %v514_v24  ;;  %v559_v47 = vadd.s32 %v517_v26, %v249_v28 }
  0x32   :  { %373 = vlog2.f32 %v114_v31  ;;  %v562_v48 = vadd.s32 %v517_v26, %v250_v29  ;;  %v119_v51 = vsub.f32 1.0, %v519_v27  ;;  %v120_v52 = vsub.f32 1.0, %v522_v30  ;;  %p441_p6 = pnand %p440_p5, %p434_p2 }
  0x33   :  { %375 = vlog2.f32 %v115_v34  ;;  %v573_v53 = vadd.s32 %v517_v26, %v251_v32  ;;  %v121_v56 = vsub.f32 1.0, %v526_v33  ;;  %v154_v57 = vsub.f32 1.0, %v539_v39 }
  0x34   :  { %v358_v54 = vpop.eup %357  ;;  %377 = vlog2.f32 %v116_v36  ;;  %v155_v58 = vsub.f32 1.0, %v541_v40  ;;  %v156_v61 = vsub.f32 1.0, %v551_v44  ;;  %v157_v62 = vsub.f32 1.0, %v553_v45 }
  0x35   :  { %v360_v59 = vpop.eup %359  ;;  %v91_v60 = vmul.f32 0.6931472, %v358_v54  ;;  %379 = vlog2.f32 %v117_v41  ;;  %v158_v1 = vsub.f32 1.0, %v564_v49  ;;  %v159_v2 = vsub.f32 1.0, %v566_v50 }
  0x36   :  { %v362_v63 = vpop.eup %361  ;;  %v93_v0 = vmul.f32 0.6931472, %v360_v59  ;;  %381 = vlog2.f32 %v118_v46  ;;  %v160_v5 = vsub.f32 1.0, %v575_v55  ;;  %vm186_vm0 = vcmp.eq.f32.partialorder %v539_v39, 1.0 }
  0x37   :  { %v364_v3 = vpop.eup %363  ;;  %383 = vlog2.f32 %v119_v51  ;;  %vm187_vm1 = vcmp.eq.f32.partialorder %v541_v40, 1.0  ;;  %v95_v7 = vmul.f32 0.6931472, %v362_v63  ;;  %vm188_vm2 = vcmp.eq.f32.partialorder %v551_v44, 1.0 }
  0x38   :  { %v366_v6 = vpop.eup %365  ;;  %385 = vlog2.f32 %v120_v52  ;;  %vm189_vm3 = vcmp.eq.f32.partialorder %v553_v45, 1.0  ;;  %v97_v9 = vmul.f32 0.6931472, %v364_v3  ;;  %v106_v10 = vmax.f32 %v91_v60, -100.0 }
  0x39   :  { %v368_v8 = vpop.eup %367  ;;  %387 = vlog2.f32 %v121_v56  ;;  %vm190_vm4 = vcmp.eq.f32.partialorder %v564_v49, 1.0  ;;  %v107_v12 = vmax.f32 %v93_v0, -100.0  ;;  %v161_v14 = vsub.f32 1.0, %v586_v4 }
  0x3a   :  { %v370_v11 = vpop.eup %369  ;;  %vm191_vm5 = vcmp.eq.f32.partialorder %v566_v50, 1.0  ;;  %vm192_vm6 = vcmp.eq.f32.partialorder %v575_v55, 1.0  ;;  %v99_v17 = vmul.f32 0.6931472, %v366_v6  ;;  %vm193_vm7 = vcmp.eq.f32.partialorder %v586_v4, 1.0 }
  0x3b   :  { %v372_v15 = vpop.eup %371  ;;  %v607_v18 = vsel %vm186_vm0, %v504_v13, %v114_v31  ;;  %v614_v19 = vsel %vm187_vm1, %v506_v16, %v115_v34  ;;  %v108_v22 = vmax.f32 %v95_v7, -100.0  ;;  %v621_v25 = vsel %vm188_vm2, %v508_v20, %v116_v36 }
  0x3c   :  { %v374_v21 = vpop.eup %373  ;;  %v626_v13 = vsel %vm189_vm3, %v511_v23, %v117_v41  ;;  %v631_v28 = vsel %vm190_vm4, %v514_v24, %v118_v46  ;;  %v101_v29 = vmul.f32 0.6931472, %v368_v8  ;;  %v109_v31 = vmax.f32 %v97_v9, -100.0 }
  0x3d   :  { %v376_v16 = vpop.eup %375  ;;  %v123_v32 = vmul.f32 0.6931472, %v374_v21  ;;  %v146_v34 = vmul.f32 %v106_v10, %v539_v39  ;;  %v103_v59 = vmul.f32 0.6931472, %v370_v11  ;;  %v147_v36 = vmul.f32 %v107_v12, %v541_v40 }
  0x3e   :  { %v378_v54 = vpop.eup %377  ;;  %v125_v20 = vmul.f32 0.6931472, %v376_v16  ;;  %v638_v23 = vsel %vm191_vm5, %v519_v27, %v119_v51  ;;  %v105_v60 = vmul.f32 0.6931472, %v372_v15  ;;  %v110_v24 = vmax.f32 %v99_v17, -100.0 }
  0x3f   :  { %v380_v41 = vpop.eup %379  ;;  %v127_v46 = vmul.f32 0.6931472, %v378_v54  ;;  %v138_v63 = vmax.f32 %v123_v32, -100.0  ;;  %v148_v7 = vmul.f32 %v108_v22, %v551_v44  ;;  %v646_v8 = vsel %vm192_vm6, %v522_v30, %v120_v52 }
  0x40   :  { %v382_v0 = vpop.eup %381  ;;  %v129_v3 = vmul.f32 0.6931472, %v380_v41  ;;  %v139_v6 = vmax.f32 %v125_v20, -100.0  ;;  %v111_v27 = vmax.f32 %v101_v29, -100.0  ;;  %v112_v15 = vmax.f32 %v103_v59, -100.0 }
  0x41   :  { %v384_v9 = vpop.eup %383  ;;  %v131_v51 = vmul.f32 0.6931472, %v382_v0  ;;  %v140_v10 = vmax.f32 %v127_v46, -100.0  ;;  %v162_v11 = vmul.f32 %v154_v57, %v138_v63  ;;  %v113_v32 = vmax.f32 %v105_v60, -100.0 }
  0x42   :  { %v386_v12 = vpop.eup %385  ;;  %v133_v17 = vmul.f32 0.6931472, %v384_v9  ;;  %v141_v21 = vmax.f32 %v129_v3, -100.0  ;;  %v163_v22 = vmul.f32 %v155_v58, %v139_v6  ;;  %v149_v30 = vmul.f32 %v109_v31, %v553_v45 }
  0x43   :  { %v388_v16 = vpop.eup %387  ;;  %v135_v54 = vmul.f32 0.6931472, %v386_v12  ;;  %v142_v20 = vmax.f32 %v131_v51, -100.0  ;;  %v150_v29 = vmul.f32 %v110_v24, %v564_v49  ;;  %v164_v41 = vmul.f32 %v156_v61, %v140_v10 }
  0x44   :  { %v137_v52 = vmul.f32 0.6931472, %v388_v16  ;;  %v201_v57 = vsel %vm193_vm7, %v526_v33, %v121_v56  ;;  %v143_v59 = vmax.f32 %v133_v17, -100.0  ;;  %v151_v58 = vmul.f32 %v111_v27, %v566_v50 }
  0x45   :  { %v170_v60 = vadd.f32 %v162_v11, %v146_v34  ;;  %v463_v46 = vmov 0.75   ;;  %v152_v63 = vmul.f32 %v112_v15, %v575_v55  ;;  %v165_v24 = vmul.f32 %v157_v62, %v141_v21 }
  0x46   :  { %v202_v31 = vsel %vm186_vm0, 0.25, %v463_v46  ;;  %v171_v61 = vadd.f32 %v163_v22, %v147_v36  ;;  %v203_v0 = vsel %vm187_vm1, 0.25, %v463_v46  ;;  %v144_v3 = vmax.f32 %v135_v54, -100.0 }
  0x47   :  { %v153_v33 = vmul.f32 %v113_v32, %v586_v4  ;;  %v166_v56 = vmul.f32 %v158_v1, %v142_v20  ;;  %v204_v34 = vsel %vm188_vm2, 0.25, %v463_v46  ;;  %v145_v39 = vmax.f32 %v137_v52, -100.0 }
  0x48   :  { %v172_v6 = vadd.f32 %v164_v41, %v148_v7  ;;  %v205_v9 = vsel %vm189_vm3, 0.25, %v463_v46  ;;  %v206_v62 = vsel %vm190_vm4, 0.25, %v463_v46  ;;  %v167_v40 = vmul.f32 %v159_v2, %v143_v59 }
  0x49   :  { %v178_v36 = vsub.f32 0.0, %v170_v60  ;;  %v210_v27 = vsub.f32 1.0, %v607_v18  ;;  %v211_v51 = vsub.f32 1.0, %v614_v19  ;;  %vm266_vm8 = vcmp.lt.s32.totalorder %v537_v38, 2048 }
  0x4a   :  { %v173_v44 = vadd.f32 %v165_v24, %v149_v30  ;;  %v179_v1 = vsub.f32 0.0, %v171_v61  ;;  %v212_v7 = vsub.f32 1.0, %v621_v25  ;;  %v213_v45 = vsub.f32 1.0, %v626_v13 }
  0x4b   :  { %v168_v49 = vmul.f32 %v160_v5, %v144_v3  ;;  %v174_v10 = vadd.f32 %v166_v56, %v150_v29  ;;  %v214_v11 = vsub.f32 1.0, %v631_v28  ;;  %v215_v2 = vsub.f32 1.0, %v638_v23 }
  0x4c   :  { %v169_v18 = vmul.f32 %v161_v14, %v145_v39  ;;  %v180_v19 = vsub.f32 0.0, %v172_v6  ;;  %v218_v12 = vmul.f32 %v210_v27, %v210_v27  ;;  %v219_v15 = vmul.f32 %v211_v51, %v211_v51 }
  0x4d   :  { %v216_v17 = vsub.f32 1.0, %v646_v8  ;;  %v220_v21 = vmul.f32 %v212_v7, %v212_v7  ;;  %v221_v25 = vmul.f32 %v213_v45, %v213_v45  ;;  %v222_v22 = vmul.f32 %v214_v11, %v214_v11 }
  0x4e   :  { %v175_v13 = vadd.f32 %v167_v40, %v151_v58  ;;  %v181_v16 = vsub.f32 0.0, %v173_v44  ;;  %v226_v32 = vmul.f32 %v218_v12, %v202_v31  ;;  %v227_v5 = vmul.f32 %v219_v15, %v203_v0 }
  0x4f   :  { %v217_v54 = vsub.f32 1.0, %v201_v57  ;;  %v223_v20 = vmul.f32 %v215_v2, %v215_v2  ;;  %v228_v28 = vmul.f32 %v220_v21, %v204_v34  ;;  %v229_v30 = vmul.f32 %v221_v25, %v205_v9 }
  0x50   :  { %v176_v23 = vadd.f32 %v168_v49, %v152_v63  ;;  %v207_v14 = vsel %vm191_vm5, 0.25, %v463_v46  ;;  %v234_v52 = vmul.f32 %v226_v32, %v178_v36  ;;  %v235_v29 = vmul.f32 %v227_v5, %v179_v1 }
  0x51   :  { %v182_v41 = vsub.f32 0.0, %v174_v10  ;;  %v224_v59 = vmul.f32 %v216_v17, %v216_v17  ;;  %v230_v8 = vmul.f32 %v222_v22, %v206_v62  ;;  %v236_v60 = vmul.f32 %v228_v28, %v180_v19 }
  0x52   :  { %v177_v24 = vadd.f32 %v169_v18, %v153_v33  ;;  %v208_v58 = vsel %vm192_vm6, 0.25, %v463_v46  ;;  %vm267_vm9 = vcmp.lt.s32.totalorder %v546_v42, 2048  ;;  %vm268_vm10 = vcmp.lt.s32.totalorder %v549_v43, 2048 }
  0x53   :  { %v183_v57 = vsub.f32 0.0, %v175_v13  ;;  %v225_v31 = vmul.f32 %v217_v54, %v217_v54  ;;  %v231_v63 = vmul.f32 %v223_v20, %v207_v14  ;;  %v237_v61 = vmul.f32 %v229_v30, %v181_v16 }
  0x54   :  { %v209_v50 = vsel %vm193_vm7, 0.25, %v463_v46  ;;  %vm269_vm11 = vcmp.lt.s32.totalorder %v559_v47, 2048  ;;  %v274_v0 = vsel %vm266_vm8, %v234_v52, 0.0  ;;  %v275_v3 = vsel %vm267_vm9, %v235_v29, 0.0 }
  0x55   :  { %v184_v33 = vsub.f32 0.0, %v176_v23  ;;  %v232_v55 = vmul.f32 %v224_v59, %v208_v58  ;;  %v238_v56 = vmul.f32 %v230_v8, %v182_v41  ;;  %v276_v34 = vsel %vm268_vm10, %v236_v60, 0.0 }
  0x56   :  { %v264_v42 = vadd.s32 %v517_v26, %v530_v35  ;;  %vm270_vm12 = vcmp.lt.s32.totalorder %v562_v48, 2048  ;;  %v317_v43 = vadd.f32 %v275_v3, %v274_v0  ;;  %v185_v39 = vsub.f32 0.0, %v177_v24 }
  0x57   :  { %v233_v6 = vmul.f32 %v225_v31, %v209_v50  ;;  %v239_v4 = vmul.f32 %v231_v63, %v183_v57  ;;  %v277_v46 = vsel %vm269_vm11, %v237_v61, 0.0  ;;  %v265_v47 = vadd.s32 %v517_v26, %v534_v37 }
  0x58   :  { %vm271_vm13 = vcmp.lt.s32.totalorder %v573_v53, 2048  ;;  %v318_v38 = vadd.f32 %v317_v43, %v276_v34  ;;  %v240_v9 = vmul.f32 %v232_v55, %v184_v33  ;;  %v278_v62 = vsel %vm270_vm12, %v238_v56, 0.0 }
  0x59   :  { %vm272_vm14 = vcmp.lt.s32.totalorder %v264_v42, 2048  ;;  %v241_v36 = vmul.f32 %v233_v6, %v185_v39  ;;  %v279_v27 = vsel %vm271_vm13, %v239_v4, 0.0  ;;  %vm273_vm15 = vcmp.lt.s32.totalorder %v265_v47, 2048 }
  0x5a   :  { %v319_v40 = vadd.f32 %v318_v38, %v277_v46  ;;  %v280_v48 = vsel %vm272_vm14, %v240_v9, 0.0 }
  0x5b   :  { %v281_v44 = vsel %vm273_vm15, %v241_v36, 0.0 }
  0x5c   :  { %v320_v35 = vadd.f32 %v319_v40, %v278_v62 }
  0x5e   :  { %v321_v51 = vadd.f32 %v320_v35, %v279_v27 }
  0x60   :  { %v322_v1 = vadd.f32 %v321_v51, %v280_v48 }
  0x62   :  { %v323_v7 = vadd.f32 %v322_v1, %v281_v44 }
  0x64   :  { %324 = vadd.xlane.f32.xlu0 %v323_v7 }
  0xf1   :  { %v325_v45 = vpop.xlane.xlu0 %324 }
  0xf2   :  { %v326_v49 = vrot.slane %v325_v45, 4 }
  0xf4   :  { %v327_v26 = vadd.f32 %v326_v49, %v325_v45 }
  0xf6   :  { %v328_v37 = vrot.slane %v327_v26, 2 }
  0xf8   :  { %v329_v53 = vadd.f32 %v328_v37, %v327_v26 }
  0xfa   :  { %v330_v10 = vrot.slane %v329_v53, 1 }
  0xfc   :  { %v331_v11 = vadd.f32 %v330_v10, %v329_v53 }
  0xfe   :  { %351 = vpush %v331_v11 }
 0x12f   :  { %s352_s5 = spop %351 }
 0x130   :  { %v333_v2 = vstv %s352_s5 }
 0x131   :  { %334 = vst [vmem:[#allocation8] sm:$0xff] %v333_v2 }
 0x132   :  { %444 = shalt.err (!%p441_p6)
}
 0x133   :  { %s445_s9 = scalar_lea.hbm %s723_s2, 128 }
 0x134   :  { %p446_p7 = scmp.ne.s32.totalorder %s723_s2, %s445_s9  ;;  %p449_p8 = scmp.lt.u32.totalorder %s445_s9, %s723_s2 }
 0x136   :  { %p451_p9 = pnand %p449_p8, %p446_p7 }
 0x138   :  { %454 = shalt.err (!%p451_p9)
}
 0x139   :  { %344 = dma.vmem_to_hbm [thread:$0]  %s342_s4, 128, %s723_s2, [#allocation5]  }
 0x13a   :  { %459 = dma.done.wait [#allocation5], 128  }
 0x13b   :  { %460 = vsyncadd [#allocation5], 4294967168 }
 0x13c   :  { %348 = vsyncpa [#allocation4], 1 }
 0x13d   :  { %349 = vsyncpa [#allocation7], 1 }
 0x13e   :  { %350 = vsyncpa [#allocation5], 1 }

</bundles_post_ra>
